<compile_context>
chip_gen: v5e
topology: v5e:2x2
jax: 0.10.0
libtpu: 0.0.40
codegen_flags: <defaults>
</compile_context>

<pallas_src>
import functools
import math

import jax
import jax.numpy as jnp
from jax.experimental import pallas as pl
from jax.experimental.pallas import tpu as pltpu


# ----------------------------------------------------------------------------
# Kernels
# ----------------------------------------------------------------------------
def _log_scalar_kernel(x_smem, o_ref, *, log_p):
    """'log' loss for a single ratio. SMEM scalar in, (1,1) VMEM out.

    |log(x) - log(p)| == log(x/p) if x > p else log(p/x); one EUP log,
    one VPU sub + abs.  The vector path is unavoidable: log has no scalar HW.
    """
    x = x_smem[0]                                       # f32 scalar from SMEM
    xv = jnp.full(o_ref.shape, x, dtype=jnp.float32)    # splat -> (1,1) tile
    o_ref[...] = jnp.abs(jnp.log(xv) - log_p)


def _poly_scalar_kernel(x_smem, o_smem, *, p, loss_type):
    """'mae' / 'mse' loss for a single ratio, entirely on the scalar core.

    SMEM (1,) in -> SMEM (1,) out: no vreg, no VPU op, no VMEM tile,
    no VMEM->HBM writeback DMA.
    """
    d = x_smem[0] - p
    if loss_type == "mae":
        o_smem[0] = jnp.maximum(d, -d)   # scalar abs (cmp-free, scalar maximumf)
    else:  # "mse"
        o_smem[0] = d * d


def _batched_kernel(x_ref, o_ref, *, p, log_p, loss_type):
    """Elementwise loss over a lane-dense (1, N) f32 block, N % 128 == 0."""
    x = x_ref[...]
    if loss_type == "log":
        o_ref[...] = jnp.abs(jnp.log(x) - log_p)
    elif loss_type == "mae":
        o_ref[...] = jnp.abs(x - p)
    else:  # "mse"
        d = x - p
        o_ref[...] = d * d


# ----------------------------------------------------------------------------
# Scalar forward (Pallas) + custom VJP
# ----------------------------------------------------------------------------
def _resource_loss_forward(resource_ratio, p, loss_type):
    assert loss_type in ("log", "mae", "mse"), f"Unknown loss type {loss_type}"
    x = jnp.asarray(resource_ratio, dtype=jnp.float32).reshape(1)

    if loss_type == "log":
        kernel = functools.partial(_log_scalar_kernel, log_p=math.log(float(p)))
        out = pl.pallas_call(
            kernel,
            out_shape=jax.ShapeDtypeStruct((1, 1), jnp.float32),
            in_specs=[pl.BlockSpec(memory_space=pltpu.SMEM)],
            out_specs=pl.BlockSpec(memory_space=pltpu.VMEM),
        )(x)
    else:
        kernel = functools.partial(
            _poly_scalar_kernel, p=float(p), loss_type=loss_type
        )
        out = pl.pallas_call(
            kernel,
            out_shape=jax.ShapeDtypeStruct((1,), jnp.float32),
            in_specs=[pl.BlockSpec(memory_space=pltpu.SMEM)],
            out_specs=pl.BlockSpec(memory_space=pltpu.SMEM),
        )(x)
    return jnp.reshape(out, ())


@functools.partial(jax.custom_vjp, nondiff_argnums=(1, 2))
def resource_loss(resource_ratio, p=0.9, loss_type="log"):
    """Pallas equivalent of ResourceLoss.forward (scalar in, scalar out)."""
    return _resource_loss_forward(resource_ratio, p, loss_type)


def _resource_loss_fwd(resource_ratio, p, loss_type):
    y = _resource_loss_forward(resource_ratio, p, loss_type)
    return y, jnp.asarray(resource_ratio, dtype=jnp.float32)


def _resource_loss_bwd(p, loss_type, x, g):
    if loss_type == "log":
        dx = jnp.sign(x - p) / x          # d/dx |log(x) - log(p)|
    elif loss_type == "mae":
        dx = jnp.sign(x - p)
    else:  # "mse"
        dx = 2.0 * (x - p)
    return (g * dx,)


resource_loss.defvjp(_resource_loss_fwd, _resource_loss_bwd)


# ----------------------------------------------------------------------------
# Batched forward: many ratios, one launch (lane-dense (1, N) block)
# ----------------------------------------------------------------------------
def resource_loss_batched(resource_ratios, p=0.9, loss_type="log"):
    """Apply the loss elementwise to many resource ratios in ONE pallas_call."""
    assert loss_type in ("log", "mae", "mse"), f"Unknown loss type {loss_type}"
    r = jnp.asarray(resource_ratios, dtype=jnp.float32).reshape(-1)
    n = r.shape[0]
    n_pad = max(128, ((n + 127) // 128) * 128)
    # Pad with p so padded entries are finite for 'log' (discarded afterwards).
    r_pad = jnp.pad(r, (0, n_pad - n), constant_values=float(p)).reshape(1, n_pad)

    kernel = functools.partial(
        _batched_kernel,
        p=float(p),
        log_p=math.log(float(p)),
        loss_type=loss_type,
    )
    out = pl.pallas_call(
        kernel,
        out_shape=jax.ShapeDtypeStruct((1, n_pad), jnp.float32),
        in_specs=[pl.BlockSpec(memory_space=pltpu.VMEM)],
        out_specs=pl.BlockSpec(memory_space=pltpu.VMEM),
    )(r_pad)
    return out.reshape(n_pad)[:n]


# ----------------------------------------------------------------------------
# Recommended production path: plain jnp (fuses into the producer of the
# ratio; no custom-call launch).  Also the correctness reference here.
# ----------------------------------------------------------------------------
def resource_loss_fused(resource_ratio, p=0.9, loss_type="log"):
    r = jnp.asarray(resource_ratio, dtype=jnp.float32)
    if loss_type == "log":
        return jnp.where(r > p, jnp.log(r / p), jnp.log(p / r))
    elif loss_type == "mae":
        return jnp.abs(r - p)
    else:
        return (r - p) ** 2


if __name__ == "__main__":
    key = jax.random.PRNGKey(0)
    k1, k2 = jax.random.split(key)
    # Deterministic strictly-positive ratios (the 'log' loss assumes > 0).
    ratio = jax.random.uniform(k1, (), dtype=jnp.float32, minval=0.5, maxval=1.5)
    ratios = jax.random.uniform(k2, (8,), dtype=jnp.float32, minval=0.5, maxval=1.5)

    p = 0.9
    ok = True
    for lt in ("log", "mae", "mse"):
        # Scalar Pallas path.
        out = jax.block_until_ready(resource_loss(ratio, p, lt))
        ref = resource_loss_fused(ratio, p, lt)
        if not jnp.allclose(out, ref, rtol=1e-6, atol=1e-6):
            ok = False
            print(f"SCALAR MISMATCH for {lt}: kernel={out}, ref={ref}")

        # Batched Pallas path (one launch for all ratios).
        out_b = jax.block_until_ready(resource_loss_batched(ratios, p, lt))
        ref_b = resource_loss_fused(ratios, p, lt)
        if not jnp.allclose(out_b, ref_b, rtol=1e-6, atol=1e-6):
            ok = False
            print(f"BATCHED MISMATCH for {lt}: kernel={out_b}, ref={ref_b}")

        # Gradient path (custom VJP; bwd is plain jnp).
        g = jax.block_until_ready(jax.grad(lambda x: resource_loss(x, p, lt))(ratio))
        g_ref = jax.grad(lambda x: resource_loss_fused(x, p, lt))(ratio)
        if not jnp.allclose(g, g_ref, rtol=1e-5, atol=1e-6):
            ok = False
            print(f"GRAD MISMATCH for {lt}: kernel={g}, ref={g_ref}")

    if ok:
        print("KERNEL_OK")
</pallas_src>

<mosaic_0001>
module attributes {stable_mosaic.version = 11 : i64} {
  func.func @_log_scalar_kernel(%arg0: memref<1xf32, #tpu.memory_space<smem>>, %arg1: memref<1x1xf32, #tpu.memory_space<vmem>>) attributes {dimension_semantics = [], scalar_prefetch = 0 : i64, scratch_operands = 0 : i64, tpu.core_type = #tpu.core_type<tc>} {
    %c0 = arith.constant 0 : index
    %0 = memref.load %arg0[%c0] : memref<1xf32, #tpu.memory_space<smem>>
    %1 = vector.broadcast %0 : f32 to vector<1x1xf32>
    %2 = math.log %1 : vector<1x1xf32>
    %cst = arith.constant -0.105360515 : f32
    %3 = vector.broadcast %cst : f32 to vector<1x1xf32>
    %4 = arith.subf %2, %3 : vector<1x1xf32>
    %5 = math.absf %4 : vector<1x1xf32>
    %c0_0 = arith.constant 0 : index
    %c0_1 = arith.constant 0 : index
    %6 = vector.load %arg1[%c0_0, %c0_1] : memref<1x1xf32, #tpu.memory_space<vmem>>, vector<1x1xf32>
    tpu.vector_store %arg1[%c0_0, %c0_1], %5 {strides = array<i32>} : memref<1x1xf32, #tpu.memory_space<vmem>>, vector<1x1xf32>,
    return
  }
}

</mosaic_0001>

<bundles_post_ra>
// kernel: tpu_custom_call.1
= control target key start
LH: loop header
LB: loop body
LE: loop exit
PB: predicated region body
PF: predicated region fallthrough
CT: control target
= control target key end

     0   :  { %s81_s0 = inlined_call_operand.<no memory space> [shape: f32[1], index: 0, kind: input, shape index: {}]   ;;  %s82_s1 = inlined_call_operand.hbm [shape: f32[1,1], index: 1, kind: output, shape index: {}]  }
   0x1   :  { %v11_v0 = vstv %s81_s0 }
   0x2   :  { %7 = vsyncpa [#allocation4], 0  ;;  %36 = vlog2.f32 %v11_v0  ;;  %s64_s8 = smov [#allocation3]   ;;  %s25_s12 = sshll.u32 %s82_s1, 4  ;;  %vm16_vm0 = vcmask 0   ;;  %s26_s12 = int_to_ptr.hbm [resolvable:$true] %s25_s12 }
   0x3   :  { %s23_s9 = sshll.u32 %s64_s8, 4  ;;  %s24_s9 = int_to_ptr.vmem [resolvable:$true] %s23_s9 }
   0x8   :  { %v37_v1 = vpop.eup %36 }
   0x9   :  { %v13_v2 = vmul.f32 0.6931472, %v37_v1 }
   0xb   :  { %v34_v3 = vadd.f32 0.105360515, %v13_v2 }
   0xd   :  { %v15_v4 = vand.u32 2147483647, %v34_v3 }
   0xf   :  { %17 = vst.msk [vmem:[#allocation3] sm:$0x1] %vm16_vm0, %v15_v4 }
  0x10   :  { %28 = dma.vmem_to_hbm [thread:$0]  %s24_s9, 16, %s26_s12, [#allocation4]  }
  0x11   :  { %62 = dma.done.wait [#allocation4], 16  }
  0x12   :  { %63 = vsyncadd [#allocation4], 4294967280 }
  0x13   :  { %33 = vsyncpa [#allocation4], 1 }

</bundles_post_ra>
